<compile_context>
chip_gen: v7x
topology: tpu7x:2x2x1
jax: 0.10.0
libtpu: 0.0.40
codegen_flags: <defaults>
</compile_context>

<pallas_src>
import jax
import jax.numpy as jnp
import numpy as np
from jax.experimental import pallas as pl
from jax.experimental.pallas import tpu as pltpu

# Deterministic surrogate "SwinUNETR" weights (1x1x1 conv, in=3 -> out=1).
W_Y = (0.30, -0.20, 0.10)
B_Y = 0.05
W_Z = (0.15, 0.25, -0.10)
B_Z = -0.02


def _fbsde_kernel(y0_ref, z_ref, dw_ref, o_ref):
    """One grid step handles TM (H, W) slices (TM tiles the padded B*D axis).

    y0_ref: (TM, H, W) bfloat16  -- y0 - 0.5*N*|z| (drift pre-folded in f32)
    z_ref : (TM, H, W) bfloat16  -- diffusion term (MXU operand)
    dw_ref: (TM, H, W) bfloat16  -- sum over the N Brownian increments
    o_ref : (TM, H, W) float32
    """
    # Batched MXU matmul over the TM slices, f32 accumulation.
    zdw = jnp.einsum("mhk,mkw->mhw", z_ref[...], dw_ref[...],
                     preferred_element_type=jnp.float32)
    o_ref[...] = y0_ref[...].astype(jnp.float32) + zdw


def _choose_tiling(m, h, w):
    """Pick (TM, grid_steps, padded_M).

    Kernel traffic per element is 2+2+2 B in + 4 B out = 10 B; the double-
    buffered pipeline working set is ~2 * TM * H * W * 10 B.  Cap that at
    ~40 MiB so the tile fits v7x's 64 MiB physical VMEM (v5e/v6e have 128 MiB
    and simply get extra headroom).  Keep the grid even and >= 2 so the single
    "parallel" axis shards across v7x's two TensorCores, and aim for only a
    handful of steps so each DMA is as large as possible (the kernel is HBM-
    bound; ~0.35 us/step fixed overhead must stay small vs. the DMA time).
    """
    bytes_per_elem = 2 + 2 + 2 + 4
    vmem_budget = 40 << 20
    tm_cap = max(1, vmem_budget // (2 * h * w * bytes_per_elem))
    target_steps = 6
    tm = max(1, min(tm_cap, pl.cdiv(m, target_steps)))
    steps = max(2, pl.cdiv(m, tm))
    if steps % 2:
        steps += 1                       # even grid -> both v7x TCs stay busy
    tm = pl.cdiv(m, steps)
    return tm, steps, tm * steps         # pad M up instead of shrinking TM


def fbsde_gen_forward(x, dw):
    """x:  (B, 3, H, W, D) float32   (PyTorch NCHWD input of SwinUNETR)
       dw: (N, B*D, H, W)  float32   pre-drawn Brownian increments (randn*0.01)
       returns y: (B, 1, H, W, D) float32."""
    B, C_in, H, W, D = x.shape
    M = B * D
    n_steps = dw.shape[0]

    wy = jnp.array(W_Y, jnp.float32)
    wz = jnp.array(W_Z, jnp.float32)
    # Surrogate y0_nn / z_nn (1x1x1 conv): one einsum per operand, emitted
    # directly in the kernel's (B, D, H, W) layout (no materialized transpose).
    y0 = jnp.einsum("bchwd,c->bdhw", x, wy) + B_Y          # (B, D, H, W) f32
    z = jnp.einsum("bchwd,c->bdhw", x, wz) + B_Z           # (B, D, H, W) f32

    # Exact loop collapse: y = (y0 - 0.5*N*|z|) + z @ sum_i dw_i.
    # Drift folded here in f32; only the final bf16 cast of the streamed
    # operands loses precision.
    y0_bf16 = (y0 - (0.5 * n_steps) * jnp.abs(z)).reshape(M, H, W) \
        .astype(jnp.bfloat16)
    z_bf16 = z.reshape(M, H, W).astype(jnp.bfloat16)
    dw_bf16 = jnp.sum(dw, axis=0).astype(jnp.bfloat16)     # (M, H, W)

    TM, steps, M_pad = _choose_tiling(M, H, W)
    if M_pad > M:
        pad = ((0, M_pad - M), (0, 0), (0, 0))
        y0_bf16 = jnp.pad(y0_bf16, pad)
        z_bf16 = jnp.pad(z_bf16, pad)
        dw_bf16 = jnp.pad(dw_bf16, pad)

    y_flat = pl.pallas_call(
        _fbsde_kernel,
        out_shape=jax.ShapeDtypeStruct((M_pad, H, W), jnp.float32),
        grid_spec=pltpu.PrefetchScalarGridSpec(
            num_scalar_prefetch=0,
            grid=(steps,),
            in_specs=[
                pl.BlockSpec((TM, H, W), lambda i: (i, 0, 0)),   # y0' (bf16)
                pl.BlockSpec((TM, H, W), lambda i: (i, 0, 0)),   # z   (bf16)
                pl.BlockSpec((TM, H, W), lambda i: (i, 0, 0)),   # dw  (bf16)
            ],
            out_specs=pl.BlockSpec((TM, H, W), lambda i: (i, 0, 0)),
        ),
        compiler_params=pltpu.CompilerParams(
            dimension_semantics=("parallel",),       # shard M tiles over TCs
            vmem_limit_bytes=48 << 20),              # 40 MiB tile budget+slack
    )(y0_bf16, z_bf16, dw_bf16)

    # (M, H, W) -> (B, D, H, W) -> (B, H, W, D) -> (B, 1, H, W, D)
    # NOTE: at the deployed size H=W=128 the lane dim is already a multiple of
    # 128; the 16x16 proxy in __main__ is for correctness only.
    return y_flat[:M].reshape(B, D, H, W).transpose(0, 2, 3, 1)[:, None]


def fbsde_gen_reference(x, dw):
    """Pure-JAX f32 reference mirroring the PyTorch forward step-by-step."""
    B, C_in, H, W, D = x.shape
    N = dw.shape[0]
    wy = jnp.array(W_Y, jnp.float32).reshape(1, C_in, 1, 1, 1)
    wz = jnp.array(W_Z, jnp.float32).reshape(1, C_in, 1, 1, 1)
    y = jnp.sum(x * wy, axis=1, keepdims=True) + B_Y          # (B,1,H,W,D)
    z = jnp.sum(x * wz, axis=1, keepdims=True) + B_Z          # (B,1,H,W,D)
    dw_full = dw.reshape(N, B, D, H, W).transpose(0, 1, 3, 4, 2)[:, :, None]
    zp = jnp.transpose(z, (0, 1, 4, 2, 3))                    # (B,1,D,H,W)
    for i in range(N):
        dwp = jnp.transpose(dw_full[i], (0, 1, 4, 2, 3))      # (B,1,D,H,W)
        zdw = jnp.matmul(zp, dwp)                             # (B,1,D,H,W)
        zdw = jnp.transpose(zdw, (0, 1, 3, 4, 2))             # (B,1,H,W,D)
        y = y - jnp.abs(z) * 0.5 + zdw
    return y


if __name__ == "__main__":
    key = jax.random.PRNGKey(0)
    B, C_in, H, W, D = 2, 3, 16, 16, 8   # small proxy for (128, 128, 32), 3 ch
    N_steps = 2                           # FBSDEGen default N=2
    kx, kdw = jax.random.split(key)
    x = jax.random.normal(kx, (B, C_in, H, W, D), dtype=jnp.float32)
    # torch.randn(z.size()) * 0.01, pre-drawn per step in kernel layout
    dw = jax.random.normal(kdw, (N_steps, B * D, H, W), dtype=jnp.float32) * 0.01

    y = fbsde_gen_forward(x, dw)
    jax.block_until_ready(y)

    y_ref = fbsde_gen_reference(x, dw)
    np.testing.assert_allclose(np.asarray(y), np.asarray(y_ref),
                               rtol=1e-2, atol=1e-2)
    print("KERNEL_OK")
</pallas_src>

<mosaic_0001>
module attributes {stable_mosaic.version = 11 : i64} {
  func.func @_fbsde_kernel(%arg0: i32, %arg1: memref<3x16x16xbf16, #tpu.memory_space<vmem>>, %arg2: memref<3x16x16xbf16, #tpu.memory_space<vmem>>, %arg3: memref<3x16x16xbf16, #tpu.memory_space<vmem>>, %arg4: memref<3x16x16xf32, #tpu.memory_space<vmem>>) attributes {dimension_semantics = [#tpu.dimension_semantics<parallel>], iteration_bounds = array<i64: 6>, scalar_prefetch = 0 : i64, scratch_operands = 0 : i64, tpu.core_type = #tpu.core_type<tc>, window_params = [{transform_indices = @transform_0, window_bounds = array<i64: 3, 16, 16>}, {transform_indices = @transform_1, window_bounds = array<i64: 3, 16, 16>}, {transform_indices = @transform_2, window_bounds = array<i64: 3, 16, 16>}, {transform_indices = @transform_3, window_bounds = array<i64: 3, 16, 16>}]} {
    %c0 = arith.constant 0 : index
    %c0_0 = arith.constant 0 : index
    %c0_1 = arith.constant 0 : index
    %0 = vector.load %arg2[%c0, %c0_0, %c0_1] : memref<3x16x16xbf16, #tpu.memory_space<vmem>>, vector<3x16x16xbf16>
    %c0_2 = arith.constant 0 : index
    %c0_3 = arith.constant 0 : index
    %c0_4 = arith.constant 0 : index
    %1 = vector.load %arg3[%c0_2, %c0_3, %c0_4] : memref<3x16x16xbf16, #tpu.memory_space<vmem>>, vector<3x16x16xbf16>
    "tpu.trace_start"() <{level = 10 : i32, message = "mhk,mkw->mhw"}> : () -> ()
    %cst = arith.constant dense<0.000000e+00> : vector<3x16x16xf32>
    %2 = tpu.matmul %0, %1, %cst {dimension_numbers = #tpu.dot_dimension_numbers<[2], [1], [1], [2], [0, 0, 0, 1, 1, 2], [0], [0]>} : vector<3x16x16xbf16>, vector<3x16x16xbf16>, vector<3x16x16xf32> -> vector<3x16x16xf32>
    "tpu.trace_stop"() : () -> ()
    %c0_5 = arith.constant 0 : index
    %c0_6 = arith.constant 0 : index
    %c0_7 = arith.constant 0 : index
    %3 = vector.load %arg1[%c0_5, %c0_6, %c0_7] : memref<3x16x16xbf16, #tpu.memory_space<vmem>>, vector<3x16x16xbf16>
    %4 = arith.extf %3 : vector<3x16x16xbf16> to vector<3x16x16xf32>
    %5 = arith.addf %4, %2 : vector<3x16x16xf32>
    %c0_8 = arith.constant 0 : index
    %c0_9 = arith.constant 0 : index
    %c0_10 = arith.constant 0 : index
    %6 = vector.load %arg4[%c0_8, %c0_9, %c0_10] : memref<3x16x16xf32, #tpu.memory_space<vmem>>, vector<3x16x16xf32>
    tpu.vector_store %arg4[%c0_8, %c0_9, %c0_10], %5 {strides = array<i32>} : memref<3x16x16xf32, #tpu.memory_space<vmem>>, vector<3x16x16xf32>,
    return
  }
  func.func @transform_0(%arg0: i32) -> (i32, i32, i32) {
    %c0_i32 = arith.constant 0 : i32
    %c0_i32_0 = arith.constant 0 : i32
    %c0_i32_1 = arith.constant 0 : i32
    return %arg0, %c0_i32, %c0_i32_0 : i32, i32, i32
  }
  func.func @transform_1(%arg0: i32) -> (i32, i32, i32) {
    %c0_i32 = arith.constant 0 : i32
    %c0_i32_0 = arith.constant 0 : i32
    %c0_i32_1 = arith.constant 0 : i32
    return %arg0, %c0_i32, %c0_i32_0 : i32, i32, i32
  }
  func.func @transform_2(%arg0: i32) -> (i32, i32, i32) {
    %c0_i32 = arith.constant 0 : i32
    %c0_i32_0 = arith.constant 0 : i32
    %c0_i32_1 = arith.constant 0 : i32
    return %arg0, %c0_i32, %c0_i32_0 : i32, i32, i32
  }
  func.func @transform_3(%arg0: i32) -> (i32, i32, i32) {
    %c0_i32 = arith.constant 0 : i32
    %c0_i32_0 = arith.constant 0 : i32
    %c0_i32_1 = arith.constant 0 : i32
    return %arg0, %c0_i32, %c0_i32_0 : i32, i32, i32
  }
}

</mosaic_0001>

<bundles_post_ra>
// kernel: tpu_custom_call.1
= control target key start
LH: loop header
LB: loop body
LE: loop exit
PB: predicated region body
PF: predicated region fallthrough
CT: control target
= control target key end

     0   :  { %s626_s12 = smov 0   ;;  %s661_s0 = inlined_call_operand.vmem [shape: bf16[18,16,16], index: 0, kind: input, shape index: {}]   ;;  %s662_s1 = inlined_call_operand.vmem [shape: bf16[18,16,16], index: 1, kind: input, shape index: {}]   ;;  %s663_s2 = inlined_call_operand.vmem [shape: bf16[18,16,16], index: 2, kind: input, shape index: {}]   ;;  %s664_s3 = inlined_call_operand.vmem [shape: f32[18,16,16], index: 3, kind: output, shape index: {}]  }
   0x1 LB: > { %s514_s13 = sadd.s32 4294967295, %s602_s12   ;;  %p518_p0 = scmp.ge.s32.totalorder %s602_s12, 1  ;;  %s602_s12 = sphi %s626_s12, %s13_s12  }
   0x2   : > { %p163_p1 = scmp.lt.s32.totalorder %s602_s12, 7 }
   0x4   : > { %p164_p2 = pnand %p518_p0, %p163_p1 }
   0x5   : > { %s201_s14 = smul.u32 (!%p164_p2), 3, %s514_s13  ;;  %v604_v0 = vmov (!%p164_p2), 0.0   ;;  %vm605_vm0 = vmmov (!%p164_p2), 0   ;;  %vm253_vm1 = vcmask (!%p164_p2), 130048  }
   0x6   : > { %167 = sbr.rel (%p164_p2) target bundleno = 245 (0xf5), region = 32  ;;  %562 = vmatprep.subr.bf16.mxu0 (!%p164_p2), %v604_v0  ;;  %564 = vmatprep.mubr.msk.bf16.mxu0 (!%p164_p2), %vm605_vm0, %v604_v0 }
   0x7   : > { %p202_p3 = scmp.lt.s32.totalorder (!%p164_p2), %s201_s14, 17  ;;  %568 = vmatprep.subr.bf16.mxu1 (!%p164_p2), %v604_v0  ;;  %570 = vmatprep.mubr.msk.bf16.mxu1 (!%p164_p2), %vm605_vm0, %v604_v0 }
   0xd   : > { %s666_s14 = smov (!%p202_p3, %s201_s14), 17 }
   0xe   : > { %s538_s15 = sshll.u32 %s666_s14, 3  ;;  %s541_s25 = sshll.u32 %s666_s14, 4 }
   0xf   : > { %s213_s18 = scalar_lea.vmem %s662_s1, %s538_s15  ;;  %s220_s21 = scalar_lea.vmem %s663_s2, %s538_s15 }
  0x10   : > { %v590_v1 = vld [vmem:[%s220_s21] sm:$0xff]   ;;  %v592_v3 = vld [vmem:[%s220_s21 + $0x10] sm:$0xff]   ;;  %v593_v4 = vld [vmem:[%s220_s21 + $0x8] sm:$0xff]   ;;  %s206_s24 = scalar_lea.vmem %s661_s0, %s538_s15  ;;  %s227_s28 = scalar_lea.vmem %s664_s3, %s541_s25 }
  0x11   : > { %v591_v2 = vld [vmem:[%s213_s18] sm:$0xff]   ;;  %563 = vmatpush3.bf16.msra.mxu0 %v590_v1  ;;  %v594_v5 = vld [vmem:[%s213_s18 + $0x8] sm:$0xff]   ;;  %569 = vmatpush3.bf16.msra.mxu1 %v593_v4  ;;  %v595_v6 = vld [vmem:[%s213_s18 + $0x10] sm:$0xff]  }
  0x12   : > { %574 = vmatprep.subr.bf16.mxu0 %v604_v0  ;;  %v543_v7 = vld [vmem:[%s206_s24] sm:$0xff]   ;;  %v554_v9 = vld [vmem:[%s206_s24 + $0x8] sm:$0xff]   ;;  %v555_v17 = vld [vmem:[%s206_s24 + $0x10] sm:$0xff]  }
  0x13   : > { %v544_v8 = vunpack.c.l.bf16 %v543_v7  ;;  %v545_v10 = vunpack.c.h.bf16 %v543_v7  ;;  %v548_v12 = vunpack.c.l.bf16 %v554_v9  ;;  %v549_v16 = vunpack.c.h.bf16 %v554_v9 }
  0x14   : > { %565 = vmatmul.mubr.msk.bf16.vlgmr.msra.gmra.mrb[0].mxu0 %vm253_vm1, %v591_v2  ;;  %571 = vmatmul.mubr.msk.bf16.vlgmr.msra.gmra.mrb[0].mxu1 %vm253_vm1, %v594_v5  ;;  %v552_v24 = vunpack.c.l.bf16 %v555_v17  ;;  %v553_v27 = vunpack.c.h.bf16 %v555_v17 }
  0x15   : > { %575 = vmatpush3.bf16.msra.mxu0 %v592_v3  ;;  %576 = vmatprep.mubr.msk.bf16.mxu0 %vm605_vm0, %v604_v0 }
  0x1c   : > { %577 = vmatmul.mubr.msk.bf16.vlgmr.msra.gmra.mrb[4].mxu0 %vm253_vm1, %v595_v6 }
  0xe7   : > { %v291_v11 = vpop.f32.mrb[0].mxu0  ;;  %v346_v20 = vpop.f32.mrb[0].mxu1 }
  0xe8   : > { %v420_v13 = vadd.f32 %v544_v8, %v291_v11  ;;  %v566_v14 = vpop.f32.mrb[1].mxu0  ;;  %v422_v21 = vadd.f32 %v548_v12, %v346_v20  ;;  %v572_v22 = vpop.f32.mrb[1].mxu1 }
  0xe9   : > { %v294_v15 = vpop.f32.mrb[2].mxu0  ;;  %v349_v23 = vpop.f32.mrb[2].mxu1 }
  0xea   : > { %426 = vst.msk [vmem:[%s227_s28] sm:$0xff] %vm253_vm1, %v420_v13  ;;  %v421_v18 = vadd.f32 %v545_v10, %v294_v15  ;;  %v567_v19 = vpop.f32.mrb[3].mxu0  ;;  %428 = vst.msk [vmem:[%s227_s28 + $0x10] sm:$0xff] %vm253_vm1, %v422_v21  ;;  %v423_v25 = vadd.f32 %v549_v16, %v349_v23  ;;  %v573_v26 = vpop.f32.mrb[3].mxu1 }
  0xec   : > { %427 = vst.msk [vmem:[%s227_s28 + $0x8] sm:$0xff] %vm253_vm1, %v421_v18  ;;  %429 = vst.msk [vmem:[%s227_s28 + $0x18] sm:$0xff] %vm253_vm1, %v423_v25 }
  0xef   : > { %v401_v28 = vpop.f32.mrb[4].mxu0 }
  0xf0   : > { %v424_v29 = vadd.f32 %v552_v24, %v401_v28  ;;  %v578_v30 = vpop.f32.mrb[5].mxu0 }
  0xf1   : > { %v404_v31 = vpop.f32.mrb[6].mxu0 }
  0xf2   : > { %430 = vst.msk [vmem:[%s227_s28 + $0x20] sm:$0xff] %vm253_vm1, %v424_v29  ;;  %v425_v32 = vadd.f32 %v553_v27, %v404_v31  ;;  %v579_v33 = vpop.f32.mrb[7].mxu0 }
  0xf4   : > { %431 = vst.msk [vmem:[%s227_s28 + $0x28] sm:$0xff] %vm253_vm1, %v425_v32 }
  0xf5 PF: > { %s13_s12 = sadd.s32 1, %s602_s12  }
  0xf6   : > { %p10_p4 = scmp.ge.s32.totalorder %s13_s12, 8  }
  0xf8   :  { %12 = sbr.rel (!%p10_p4) target bundleno = 1 (0x1), region = 68 }

</bundles_post_ra>
